<compile_context>
chip_gen: v6e
topology: v6e:2x2x1
jax: 0.10.0
libtpu: 0.0.40
codegen_flags: <defaults>
</compile_context>

<pallas_src>
import functools

import jax
import jax.numpy as jnp
from jax.experimental import pallas as pl
from jax.experimental.pallas import tpu as pltpu


def _round_up(x: int, m: int) -> int:
    return ((x + m - 1) // m) * m


@functools.lru_cache(maxsize=1)
def _vmem_capacity_bytes() -> int:
    """Physical VMEM bytes of the local TPU (conservative fallback: 64 MiB)."""
    try:
        return int(pltpu.get_tpu_info().vmem_capacity_bytes)
    except Exception:
        return 64 << 20  # v7x-sized, safe on every generation


def _mo_kernel(ao_ref, w_ref, out_ref):
    # Streamed (block_m, Nao) tile @ resident (Nao, Nmo) weight on the MXU,
    # f32 accumulation, cast back to the output dtype on store.
    out_ref[...] = jnp.dot(
        ao_ref[...], w_ref[...], preferred_element_type=jnp.float32
    ).astype(out_ref.dtype)


@functools.partial(jax.jit, static_argnames=("block_m", "use_pallas"))
def molecular_orbitals_forward(ao, mo_scf, mo_modifier, *,
                               block_m: int | None = None,
                               use_pallas: bool | None = None):
    """ao: (Nbatch, Nelec, Nao) -> (Nbatch, Nelec, Nmo_opt)."""
    nbatch, nelec, nao = ao.shape
    nao_w, nmo = mo_scf.shape
    assert nao == nao_w and mo_modifier.shape == mo_scf.shape

    m = nbatch * nelec

    # Tiny problems: XLA's fused einsum beats the Pallas launch/step overhead.
    if use_pallas is None:
        use_pallas = (m * nao) >= (1 << 16)
    if not use_pallas:
        weight = mo_scf * mo_modifier
        return jnp.einsum("bea,am->bem", ao, weight)

    itemsize = jnp.dtype(ao.dtype).itemsize
    sublane = max(8, 32 // itemsize)  # 8 for f32, 16 for bf16

    # --- output lane width: pad Nmo to 128 only when the overhead is <= 1/8;
    # otherwise keep the natural width (fewer HBM output bytes wins for
    # small Nmo in this bandwidth-bound regime).
    nmo_p = _round_up(nmo, 128)
    pad_cols = (nmo_p != nmo) and (nmo_p * 8 <= nmo * 9)
    nmo_out = nmo_p if pad_cols else nmo

    # --- fuse the weight modification once (tiny Nao x Nmo elementwise op).
    weight = (mo_scf * mo_modifier).astype(ao.dtype)
    if pad_cols:
        weight = jnp.pad(weight, ((0, 0), (0, nmo_out - nmo)))
    weight_bytes = nao * nmo_out * itemsize

    # --- M tile from the per-generation VMEM budget.
    if block_m is None:
        vmem_cap = _vmem_capacity_bytes()
        usable = min(vmem_cap // 2, 64 << 20)          # 64 MiB v5e/v6e, 32 MiB v7x
        stream_budget = max(usable - 2 * weight_bytes, 4 << 20)
        per_row = 2 * (nao + nmo_out) * itemsize       # double-buffered ao + out
        block_m = min(stream_budget // per_row, 4096)
        # >= 2 grid steps when possible: v7x megacore split + pipeline overlap.
        block_m = min(block_m, _round_up(pl.cdiv(m, 2), sublane))
    block_m = max(sublane, (int(block_m) // sublane) * sublane)
    if block_m >= m:
        block_m = m  # single full block (full-dim block is legal at any size)
    grid_m = pl.cdiv(m, block_m)

    # VMEM: double-buffered ao/out streams + single-buffered resident weight
    # (counted twice for slack), plus headroom; never above physical capacity.
    vmem_needed = 2 * block_m * (nao + nmo_out) * itemsize + 2 * weight_bytes
    vmem_limit = int(min(max(vmem_needed + (4 << 20), 32 << 20),
                         _vmem_capacity_bytes()))

    cost = pl.CostEstimate(
        flops=2 * m * nao * nmo_out,
        bytes_accessed=itemsize * (m * nao + m * nmo_out + nao * nmo_out),
        transcendentals=0,
    )

    ao2d = ao.reshape(m, nao)  # metadata-only reshape, no HBM pass

    out2d = pl.pallas_call(
        _mo_kernel,
        out_shape=jax.ShapeDtypeStruct((m, nmo_out), ao.dtype),
        grid=(grid_m,),
        in_specs=[
            # streamed ao tiles (double-buffered by the pipeline)
            pl.BlockSpec((block_m, nao), lambda i: (i, 0)),
            # VMEM-resident fused weight; constant block index -> single buffer
            pl.BlockSpec((nao, nmo_out), lambda i: (0, 0),
                         pipeline_mode=pl.Buffered(1)),
        ],
        out_specs=pl.BlockSpec((block_m, nmo_out), lambda i: (i, 0)),
        compiler_params=pltpu.CompilerParams(
            dimension_semantics=("parallel",),
            vmem_limit_bytes=vmem_limit,
        ),
        cost_estimate=cost,
    )(ao2d, weight)

    if pad_cols:
        out2d = out2d[:, :nmo]
    return out2d.reshape(nbatch, nelec, nmo)


def reference_forward(ao, mo_scf, mo_modifier):
    weight = mo_scf * mo_modifier
    return jnp.einsum("bea,am->bem", ao, weight)


if __name__ == "__main__":
    key = jax.random.PRNGKey(0)
    k_mos, k_mod, k_ao = jax.random.split(key, 3)

    # Small synthetic "molecule": Nao basis functions, Nmo molecular orbitals.
    nbatch, nelec, nao, nmo_total = 2, 8, 32, 32
    include_all_mo = False
    highest_occ_mo = 16
    nmo_opt = nmo_total if include_all_mo else highest_occ_mo

    # Deterministic synthetic mol.basis.mos : (Nao, Nmo_total)
    mos_full = jax.random.normal(k_mos, (nao, nmo_total), dtype=jnp.float32)
    # get_mo_coeffs(): slice occupied columns if not include_all_mo
    mo_scf = mos_full if include_all_mo else mos_full[:, :highest_occ_mo]
    # nn.Parameter(torch.ones_like(mo_scf)) -- perturb slightly so the fused
    # elementwise modification is actually exercised.
    mo_modifier = jnp.ones_like(mo_scf) + 0.01 * jax.random.normal(
        k_mod, mo_scf.shape, dtype=jnp.float32)

    # Atomic orbital values (Nbatch, Nelec, Nao)
    ao = jax.random.normal(k_ao, (nbatch, nelec, nao), dtype=jnp.float32)

    # Force the Pallas path even at these toy sizes so the kernel is exercised.
    out = molecular_orbitals_forward(ao, mo_scf, mo_modifier, use_pallas=True)
    out = jax.block_until_ready(out)

    ref = reference_forward(ao, mo_scf, mo_modifier)
    assert out.shape == (nbatch, nelec, nmo_opt)
    assert jnp.allclose(out, ref, atol=1e-5, rtol=1e-5)

    # Also sanity-check the auto-dispatch fallback (einsum path) agrees.
    out_fb = molecular_orbitals_forward(ao, mo_scf, mo_modifier)
    assert jnp.allclose(out_fb, ref, atol=1e-5, rtol=1e-5)

    print("KERNEL_OK")
</pallas_src>

<mosaic_0001>
module attributes {stable_mosaic.version = 11 : i64} {
  func.func @_mo_kernel(%arg0: i32, %arg1: memref<8x32xf32, #tpu.memory_space<vmem>>, %arg2: memref<32x16xf32, #tpu.memory_space<vmem>>, %arg3: memref<8x16xf32, #tpu.memory_space<vmem>>) attributes {dimension_semantics = [#tpu.dimension_semantics<parallel>], iteration_bounds = array<i64: 2>, scalar_prefetch = 0 : i64, scratch_operands = 0 : i64, tpu.core_type = #tpu.core_type<tc>, window_params = [{transform_indices = @transform_0, window_bounds = array<i64: 8, 32>}, {pipeline_mode = #tpu.pipeline_mode<synchronous>, transform_indices = @transform_1, window_bounds = array<i64: 32, 16>}, {transform_indices = @transform_2, window_bounds = array<i64: 8, 16>}]} {
    %c0 = arith.constant 0 : index
    %c0_0 = arith.constant 0 : index
    %0 = vector.load %arg1[%c0, %c0_0] : memref<8x32xf32, #tpu.memory_space<vmem>>, vector<8x32xf32>
    %c0_1 = arith.constant 0 : index
    %c0_2 = arith.constant 0 : index
    %1 = vector.load %arg2[%c0_1, %c0_2] : memref<32x16xf32, #tpu.memory_space<vmem>>, vector<32x16xf32>
    %cst = arith.constant dense<0.000000e+00> : vector<8x16xf32>
    %2 = tpu.matmul %0, %1, %cst {dimension_numbers = #tpu.dot_dimension_numbers<[1], [0], [0], [1], [0, 0, 1, 1], [], []>} : vector<8x32xf32>, vector<32x16xf32>, vector<8x16xf32> -> vector<8x16xf32>
    %c0_3 = arith.constant 0 : index
    %c0_4 = arith.constant 0 : index
    %3 = vector.load %arg3[%c0_3, %c0_4] : memref<8x16xf32, #tpu.memory_space<vmem>>, vector<8x16xf32>
    tpu.vector_store %arg3[%c0_3, %c0_4], %2 {strides = array<i32>} : memref<8x16xf32, #tpu.memory_space<vmem>>, vector<8x16xf32>,
    return
  }
  func.func @transform_0(%arg0: i32) -> (i32, i32) {
    %c0_i32 = arith.constant 0 : i32
    %c0_i32_0 = arith.constant 0 : i32
    return %arg0, %c0_i32 : i32, i32
  }
  func.func @transform_1(%arg0: i32) -> (i32, i32) {
    %c0_i32 = arith.constant 0 : i32
    %c0_i32_0 = arith.constant 0 : i32
    %c0_i32_1 = arith.constant 0 : i32
    return %c0_i32, %c0_i32_0 : i32, i32
  }
  func.func @transform_2(%arg0: i32) -> (i32, i32) {
    %c0_i32 = arith.constant 0 : i32
    %c0_i32_0 = arith.constant 0 : i32
    return %arg0, %c0_i32 : i32, i32
  }
}

</mosaic_0001>

<bundles_post_ra>
// kernel: mul.1
= control target key start
LH: loop header
LB: loop body
LE: loop exit
PB: predicated region body
PF: predicated region fallthrough
CT: control target
= control target key end

     0   :  { %3 = vsyncpa [#allocation1], 0  ;;  %s126_s0 = inlined_call_operand.hbm [shape: f32[32,16], index: 0, kind: input, shape index: {}]   ;;  %s127_s1 = inlined_call_operand.hbm [shape: f32[32,16], index: 1, kind: input, shape index: {}]   ;;  %s128_s2 = inlined_call_operand.vmem [shape: f32[32,16], index: 2, kind: output, shape index: {}]  }
   0x1   :  { %4 = vsyncpa [#allocation3], 0  ;;  %s95_s9 = smov [#allocation0]  }
   0x2   :  { %s8_s10 = sshll.u32 %s95_s9, 4  ;;  %s9_s10 = int_to_ptr.vmem [resolvable:$true] %s8_s10 }
   0x3   :  { %s59_s11 = scalar_lea.vmem %s9_s10, 256  ;;  %p64_p1 = scmp.lt.s32.totalorder %s9_s10, %s9_s10 }
   0x4   :  { %p60_p0 = scmp.ne.s32.totalorder %s9_s10, %s59_s11  ;;  %p65_p2 = scmp.lt.s32.totalorder %s59_s11, %s59_s11 }
   0x6   :  { %p66_p3 = por %p65_p2, %p64_p1 }
   0x8   :  { %p67_p4 = pnand %p66_p3, %p60_p0 }
   0xa   :  { %70 = shalt.err (!%p67_p4)
}
   0xb   :  { %s96_s12 = smov 128   ;;  %s97_s13 = smov 8  }
   0xc   :  { %14 = dma.hbm_to_vmem [thread:$0]  %s126_s0, 256, %s9_s10, [#allocation1], %s96_s12, %s96_s12, %s97_s13  }
   0xd   :  { %s98_s0 = smov [#allocation2]  }
   0xe   :  { %s18_s16 = sshll.u32 %s98_s0, 4  ;;  %s19_s16 = int_to_ptr.vmem [resolvable:$true] %s18_s16 }
   0xf   :  { %s79_s17 = scalar_lea.vmem %s19_s16, 256  ;;  %p84_p6 = scmp.lt.s32.totalorder %s19_s16, %s19_s16 }
  0x10   :  { %p80_p5 = scmp.ne.s32.totalorder %s19_s16, %s79_s17  ;;  %p85_p7 = scmp.lt.s32.totalorder %s79_s17, %s79_s17 }
  0x12   :  { %p86_p8 = por %p85_p7, %p84_p6 }
  0x14   :  { %p87_p9 = pnand %p86_p8, %p80_p5 }
  0x16   :  { %90 = shalt.err (!%p87_p9)
}
  0x17   :  { %24 = dma.hbm_to_vmem [thread:$0]  %s127_s1, 256, %s19_s16, [#allocation3], %s96_s12, %s96_s12, %s97_s13  }
  0x18   :  { %91 = dma.done.wait [#allocation1], 256  }
  0x19   :  { %92 = vsyncadd [#allocation1], 4294967040 }
  0x1a   :  { %93 = dma.done.wait [#allocation3], 256  }
  0x1b   :  { %94 = vsyncadd [#allocation3], 4294967040  ;;  %v27_v0 = vld [vmem:[#allocation0] sm:$0xff]  ;;  %v28_v1 = vld [vmem:[#allocation2] sm:$0xff] }
  0x1c   :  { %v35_v2 = vld [vmem:[#allocation0 + $0x8] sm:$0xff]  ;;  %v31_v3 = vmul.f32 %v28_v1, %v27_v0  ;;  %v37_v4 = vld [vmem:[#allocation2 + $0x8] sm:$0xff] }
  0x1d   :  { %v40_v5 = vmul.f32 %v37_v4, %v35_v2 }
  0x1e   :  { %33 = vst [vmem:[%s128_s2] sm:$0xff] %v31_v3 }
  0x1f   :  { %46 = vst [vmem:[%s128_s2 + $0x8] sm:$0xff] %v40_v5 }
  0x20   :  { %44 = vsyncpa [#allocation1], 1 }
  0x21   :  { %45 = vsyncpa [#allocation3], 1 }

// kernel: molecular_orbitals_forward.1
= control target key start
LH: loop header
LB: loop body
LE: loop exit
PB: predicated region body
PF: predicated region fallthrough
CT: control target
= control target key end

     0   :  { %7 = vsyncpa [#allocation3], 0  ;;  %s552_s0 = inlined_call_operand.vmem [shape: f32[16,32], index: 0, kind: input, shape index: {}]   ;;  %s553_s1 = inlined_call_operand.vmem [shape: f32[32,16], index: 1, kind: input, shape index: {}]   ;;  %s554_s2 = inlined_call_operand.hbm [shape: f32[16,16], index: 2, kind: output, shape index: {}]  }
   0x1   :  { %9 = vsyncpa [#allocation3 + $0x1], 0  ;;  %s441_s9 = smov 0   ;;  %s443_s10 = smov 0  }
   0x2   :  { %s445_s11 = smov 0   ;;  %s447_s12 = smov 0  }
   0x3 LB: > { %s462_s13 = sadd.s32 4294967295, %s421_s12   ;;  %s293_s14 = sadd.s32 4294967294, %s421_s12   ;;  %s421_s12 = sphi %s447_s12, %s560_s12   ;;  %s417_s11 = sphi %s445_s11, %s559_s11   ;;  %s413_s10 = sphi %s443_s10, %s558_s10   ;;  %s409_s9 = sphi %s441_s9, %s557_s9  }
   0x4   : > { %s466_s15 = sadd.s32 1, %s421_s12   ;;  %s69_s16 = sadd.s32 1, %s417_s11 }
   0x5   : > { %s66_s17 = ssub.s32 %s421_s12, %s466_s15  ;;  %p79_p0 = scmp.ne.s32.totalorder %s417_s11, %s413_s10 }
   0x6   : > { %p67_p1 = scmp.eq.s32.totalorder %s66_s17, 0  ;;  %p80_p2 = scmp.eq.s32.totalorder %s462_s13, 1 }
   0x7   : > { %p85_p3 = scmp.ne.s32.totalorder %s413_s10, %s409_s9  ;;  %p86_p4 = scmp.eq.s32.totalorder %s293_s14, 1 }
   0x8   : > { %s477_s18 = scalar_select %p67_p1, %s417_s11, %s69_s16  }
   0x9   : > { %p479_p5 = por %p80_p2, %p79_p0  ;;  %p483_p6 = por %p86_p4, %p85_p3 }
   0xa   : > { %p296_p7 = scmp.ge.s32.totalorder %s421_s12, 1  ;;  %p114_p8 = scmp.lt.s32.totalorder %s421_s12, 3 }
   0xc   : > { %p115_p9 = pnand %p296_p7, %p114_p8 }
   0xd   : > { %p135_p10 = scmp.lt.s32.totalorder (!%p115_p9), %s462_s13, 1  ;;  %s132_s6 = sand.u32 (!%p115_p9), 1, %s413_s10  }
   0xe   : > { %118 = sbr.rel (%p115_p9) target bundleno = 235 (0xeb), region = 28  ;;  %s297_s7 = sshll.u32 (!%p115_p9), %s132_s6, 3 }
   0xf   : > { %s301_s8 = sshll.u32 (!%p115_p9), %s462_s13, 7  ;;  %s134_s14 = scalar_lea.vmem (!%p115_p9), [#allocation2], %s297_s7 }
  0x10   : > { %s234_s16 = sshll.u32 (!%p115_p9), %s134_s14, 4  ;;  %s511_s22 = scalar_lea.hbm (!%p115_p9), %s554_s2, %s301_s8  ;;  %s513_s16 = int_to_ptr.vmem [resolvable:$true] %s234_s16 }
  0x11   : > { %s221_s23 = scalar_lea.sflag (!%p115_p9), [#allocation3], %s132_s6  ;;  %s361_s24 = scalar_lea.vmem (!%p115_p9), %s513_s16, 128 }
  0x12   : > { %p362_p11 = scmp.ne.s32.totalorder (!%p115_p9), %s513_s16, %s361_s24 }
  0x13   : > { %v143_v0 = vld [vmem:[%s553_s1 + $0x18] sm:$0xff]  ;;  %v423_v1 = vmov 0.0   ;;  %v142_v2 = vld [vmem:[%s553_s1 + $0x10] sm:$0xff]  ;;  %vm424_vm0 = vmmov 0   ;;  %s136_s25 = scalar_select %p135_p10, %s462_s13, 1  ;;  %v141_v3 = vld [vmem:[%s553_s1 + $0x8] sm:$0xff] }
  0x14   : > { %309 = vmatprep.subr.mxu0 %v423_v1  ;;  %317 = vmatprep.mubr.msk.f32.mxu0 %vm424_vm0, %v423_v1  ;;  %v140_v4 = vld [vmem:[%s553_s1] sm:$0xff]  ;;  %vm144_vm1 = vcmask 261120   ;;  %vm218_vm2 = vcmask 130048   ;;  %p363_p12 = pnand %p362_p11, %p479_p5  ;;  %s425_s13 = smov [#allocation2]  }
  0x15   : > { %310 = vmatpush3.msra.mxu0 %v143_v0  ;;  %s298_s28 = sshll.u32 %s136_s25, 3  ;;  %s365_s25 = sshll.u32 %s425_s13, 4  ;;  %s366_s25 = int_to_ptr.vmem [resolvable:$false] %s365_s25 }
  0x16   : > { %311 = vmatprep.subr.mxu0 %v423_v1  ;;  %s138_s5 = scalar_lea.vmem %s552_s0, %s298_s28  ;;  %p364_p13 = pneg %p363_p12 }
  0x17   : > { %312 = vmatpush3.msra.mxu0 %v142_v2  ;;  %v139_v5 = vld [vmem:[%s138_s5] sm:$0xff]  ;;  %s367_s26 = scalar_lea.vmem %s366_s25, 256  ;;  %p368_p0 = scmp.lt.s32.totalorder %s513_s16, %s366_s25 }
  0x18   : > { %313 = vmatprep.subr.mxu0 %v423_v1  ;;  %p369_p1 = scmp.lt.s32.totalorder %s367_s26, %s361_s24 }
  0x19   : > { %314 = vmatpush3.msra.mxu0 %v141_v3 }
  0x1a   : > { %315 = vmatprep.subr.mxu0 %v423_v1  ;;  %p370_p2 = por %p369_p1, %p368_p0 }
  0x1b   : > { %316 = vmatpush3.msra.mxu0 %v140_v4 }
  0x1c   : > { %318 = vmatmul.mubr.msk.f32.vlgmr.msra.gmra.mxu0 %vm144_vm1, %v139_v5  ;;  %p371_p3 = pnand %p370_p2, %p364_p13 }
  0xdc   : > { %v214_v6 = vpop.f32.mrf.mxu0 }
  0xdd   : > { %219 = vst.msk [vmem:[%s134_s14] sm:$0xff] %vm218_vm2, %v214_v6 }
  0xde   : > { %v319_v7 = vpop.f32.mrf.mxu0 }
  0xdf   : > { %374 = shalt.err (!%p371_p3)
}
  0xe0   : > { %s375_s27 = scalar_lea.hbm %s511_s22, 128  ;;  %s379_s30 = scalar_lea.hbm %s554_s2, 256 }
  0xe1   : > { %p376_p4 = scmp.ne.s32.totalorder %s511_s22, %s375_s27  ;;  %p380_p9 = scmp.lt.s32.totalorder %s511_s22, %s554_s2 }
  0xe2   : > { %p381_p10 = scmp.lt.s32.totalorder %s379_s30, %s375_s27 }
  0xe3   : > { %p377_p7 = pnand %p376_p4, %p479_p5 }
  0xe4   : > { %p382_p11 = por %p381_p10, %p380_p9 }
  0xe5   : > { %p378_p8 = pneg %p377_p7 }
  0xe7   : > { %p383_p12 = pnand %p382_p11, %p378_p8 }
  0xe9   : > { %386 = shalt.err (!%p383_p12)
}
  0xea   : > { %320 = dma.vmem_to_hbm [thread:$0]  (%p479_p5), %s513_s16, 128, %s511_s22, %s221_s23  }
  0xeb PF: > { %p326_p13 = scmp.ge.s32.totalorder %s421_s12, 2  ;;  %s246_s5 = sand.u32 1, %s409_s9  }
  0xec   : > { %s247_s6 = scalar_lea.sflag [#allocation3], %s246_s5 }
  0xed   : > { %p323_p0 = pnand %p326_p13, %p483_p6 }
  0xef   : > { %p324_p1 = pneg %p323_p0 }
  0xf1   : > { %404 = dma.done.wait (%p324_p1), %s247_s6, 128  }
  0xf2   : > { %406 = vsyncadd (%p324_p1), %s247_s6, 4294967168  ;;  %p12_p2 = scmp.ge.s32.totalorder %s466_s15, 4   ;;  %s557_s9 = smov %s413_s10 }
  0xf3   : > { %s558_s10 = smov %s417_s11  ;;  %s559_s11 = smov %s477_s18 }
  0xf4   : > { %s560_s12 = smov %s466_s15  ;;  %14 = sbr.rel (!%p12_p2) target bundleno = 3 (0x3), region = 63 }
  0xf9   :  { %252 = vsyncpa [#allocation3], 1 }
  0xfa   :  { %254 = vsyncpa [#allocation3 + $0x1], 1 }

</bundles_post_ra>
